<compile_context>
chip_gen: v7x
topology: tpu7x:2x2x1
jax: 0.10.0
libtpu: 0.0.40
codegen_flags: <defaults>
</compile_context>

<pallas_src>
import math

import jax
import jax.numpy as jnp
from jax.experimental import pallas as pl
from jax.experimental.pallas import tpu as pltpu


def _regression_kernel(xT_ref, w1_ref, b1_ref, w2_ref, b2_ref, o_ref):
    # xT_ref : [p+1, TN]   (f32 or bf16)  batch on lanes
    # w1_ref : [H, p+1]    (f32 or bf16)  augmented + padded fc1 weight (factor folded in)
    # b1_ref : [H, 1]      f32
    # w2_ref : [H, 1]      f32
    # b2_ref : [1]         f32 (SMEM)
    # o_ref  : [1, TN]     f32            lane-dense output
    z1 = jnp.dot(w1_ref[...], xT_ref[...],
                 preferred_element_type=jnp.float32)          # [H, TN] MXU, f32 acc
    z1 = z1 + b1_ref[...]                                     # broadcast over lanes (VPU)
    h1 = jnp.tanh(z1)                                         # EUP, f32
    # fc2 with a 1-wide output: VPU multiply + cross-sublane reduce (XLU)
    # instead of an MXU matmul with a [H,1] RHS.
    z2 = jnp.sum(h1 * w2_ref[...], axis=0, keepdims=True) + b2_ref[0]   # [1, TN]
    o_ref[...] = z2.astype(o_ref.dtype)


def regression_nn_forward(x, w1, b1, w2, b2, factor, *,
                          tile_n=512, compute_dtype=jnp.float32):
    """x: [N, p]; w1: [hidden, p]; b1: [hidden]; w2: [1, hidden]; b2: [1]; factor: scalar."""
    x = jnp.asarray(x, jnp.float32)
    N, p = x.shape
    hidden = int(w1.shape[0])

    # ---- host-side layout prep (layout plumbing, not compute hoisting) ----
    # Fold the cross term into fc1: extra feature column x0*x1, extra weight col `factor`.
    cross = (x[:, 0] * x[:, 1])[:, None]                      # [N, 1]
    x_aug = jnp.concatenate([x, cross], axis=1)               # [N, p+1]
    p1 = p + 1

    fac = jnp.asarray(factor, jnp.float32)
    w1_aug = jnp.concatenate(
        [jnp.asarray(w1, jnp.float32),
         jnp.ones((hidden, 1), jnp.float32) * fac], axis=1)   # [hidden, p+1]

    # Pad hidden to a multiple of 8 (sublane granularity); zero pads keep results exact.
    H = max(8, ((hidden + 7) // 8) * 8)
    w1_aug = jnp.pad(w1_aug, ((0, H - hidden), (0, 0)))                          # [H, p+1]
    b1_col = jnp.pad(jnp.asarray(b1, jnp.float32).reshape(hidden, 1),
                     ((0, H - hidden), (0, 0)))                                  # [H, 1]
    w2_col = jnp.pad(jnp.asarray(w2, jnp.float32).reshape(hidden, 1),
                     ((0, H - hidden), (0, 0)))                                  # [H, 1]
    b2_s = jnp.asarray(b2, jnp.float32).reshape(1)                               # [1] SMEM

    # Tile the batch dimension; pad N to a multiple of tile_n (multiple of 128).
    tn = int(tile_n)
    assert tn % 128 == 0, "tile_n must be a multiple of 128 (lane width)"
    n_pad = ((N + tn - 1) // tn) * tn
    xT = jnp.pad(x_aug, ((0, n_pad - N), (0, 0))).T           # [p+1, n_pad], batch on lanes

    if compute_dtype != jnp.float32:
        # bf16 MXU operands (bandwidth win on v6e/v7x); elementwise math stays f32.
        xT = xT.astype(compute_dtype)
        w1_aug = w1_aug.astype(compute_dtype)

    grid = (n_pad // tn,)

    out = pl.pallas_call(
        _regression_kernel,
        out_shape=jax.ShapeDtypeStruct((1, n_pad), jnp.float32),
        grid=grid,
        in_specs=[
            pl.BlockSpec((p1, tn), lambda i: (0, i)),         # xT tile, streamed over N
            pl.BlockSpec((H, p1), lambda i: (0, 0)),          # weights: VMEM-resident
            pl.BlockSpec((H, 1), lambda i: (0, 0)),
            pl.BlockSpec((H, 1), lambda i: (0, 0)),
            pl.BlockSpec(memory_space=pltpu.SMEM),            # b2 scalar
        ],
        out_specs=pl.BlockSpec((1, tn), lambda i: (0, i)),    # lane-dense output
        compiler_params=pltpu.CompilerParams(
            dimension_semantics=("parallel",)),               # shard N-tiles across TCs (v7x)
    )(xT, w1_aug, b1_col, w2_col, b2_s)

    return out[0, :N].reshape(N, 1)


def _init_params(key, p, hidden):
    """Deterministic init mimicking PyTorch nn.Linear (uniform +/- 1/sqrt(fan_in))."""
    k1, k2, k3, k4 = jax.random.split(key, 4)
    bound1 = 1.0 / math.sqrt(p)
    w1 = jax.random.uniform(k1, (hidden, p), jnp.float32, -bound1, bound1)
    b1 = jax.random.uniform(k2, (hidden,), jnp.float32, -bound1, bound1)
    bound2 = 1.0 / math.sqrt(hidden)
    w2 = jax.random.uniform(k3, (1, hidden), jnp.float32, -bound2, bound2)
    b2 = jax.random.uniform(k4, (1,), jnp.float32, -bound2, bound2)
    factor = jnp.float32(1.0)
    return w1, b1, w2, b2, factor


def _reference(x, w1, b1, w2, b2, factor):
    z1 = x @ w1.T + b1 + (factor * x[:, 0] * x[:, 1])[:, None]
    h1 = jnp.tanh(z1)
    return h1 @ w2.T + b2


if __name__ == "__main__":
    key = jax.random.PRNGKey(0)
    kx, kp = jax.random.split(key)

    # Small shapes consistent with the module; N chosen so the grid has >1
    # (parallel) step and exercises the N-padding path.
    N, p, hidden = 1000, 4, 32
    x = jax.random.normal(kx, (N, p), jnp.float32)
    w1, b1, w2, b2, factor = _init_params(kp, p, hidden)

    ref = _reference(x, w1, b1, w2, b2, factor)

    # f32 path (exact check)
    out = jax.block_until_ready(regression_nn_forward(x, w1, b1, w2, b2, factor))
    assert out.shape == (N, 1)
    assert jnp.allclose(out, ref, atol=1e-4, rtol=1e-4), "f32 mismatch vs reference"

    # bf16 matmul-operand path (bandwidth path for v6e/v7x), loose sanity check
    out_bf16 = jax.block_until_ready(
        regression_nn_forward(x, w1, b1, w2, b2, factor,
                              compute_dtype=jnp.bfloat16))
    assert out_bf16.shape == (N, 1)
    assert jnp.allclose(out_bf16, ref, atol=1e-1, rtol=1e-1), "bf16 mismatch vs reference"

    print("KERNEL_OK")
</pallas_src>

<mosaic_0001>
module attributes {stable_mosaic.version = 11 : i64} {
  func.func @_regression_kernel(%arg0: i32, %arg1: memref<5x512xf32, #tpu.memory_space<vmem>>, %arg2: memref<32x5xf32, #tpu.memory_space<vmem>>, %arg3: memref<32x1xf32, #tpu.memory_space<vmem>>, %arg4: memref<32x1xf32, #tpu.memory_space<vmem>>, %arg5: memref<1xf32, #tpu.memory_space<smem>>, %arg6: memref<1x512xf32, #tpu.memory_space<vmem>>) attributes {dimension_semantics = [#tpu.dimension_semantics<parallel>], iteration_bounds = array<i64: 2>, scalar_prefetch = 0 : i64, scratch_operands = 0 : i64, tpu.core_type = #tpu.core_type<tc>, window_params = [{transform_indices = @transform_0, window_bounds = array<i64: 5, 512>}, {pipeline_mode = #tpu.pipeline_mode<synchronous>, transform_indices = @transform_1, window_bounds = array<i64: 32, 5>}, {pipeline_mode = #tpu.pipeline_mode<synchronous>, transform_indices = @transform_2, window_bounds = array<i64: 32, 1>}, {pipeline_mode = #tpu.pipeline_mode<synchronous>, transform_indices = @transform_3, window_bounds = array<i64: 32, 1>}, {transform_indices = @transform_4, window_bounds = array<i64: 1>}, {transform_indices = @transform_5, window_bounds = array<i64: 1, 512>}]} {
    %c0 = arith.constant 0 : index
    %c0_0 = arith.constant 0 : index
    %0 = vector.load %arg2[%c0, %c0_0] : memref<32x5xf32, #tpu.memory_space<vmem>>, vector<32x5xf32>
    %c0_1 = arith.constant 0 : index
    %c0_2 = arith.constant 0 : index
    %1 = vector.load %arg1[%c0_1, %c0_2] : memref<5x512xf32, #tpu.memory_space<vmem>>, vector<5x512xf32>
    %cst = arith.constant dense<0.000000e+00> : vector<32x512xf32>
    %2 = tpu.matmul %0, %1, %cst {dimension_numbers = #tpu.dot_dimension_numbers<[1], [0], [0], [1], [0, 0, 1, 1], [], []>} : vector<32x5xf32>, vector<5x512xf32>, vector<32x512xf32> -> vector<32x512xf32>
    %c0_3 = arith.constant 0 : index
    %c0_4 = arith.constant 0 : index
    %3 = vector.load %arg3[%c0_3, %c0_4] : memref<32x1xf32, #tpu.memory_space<vmem>>, vector<32x1xf32>
    %4 = vector.broadcast %3 : vector<32x1xf32> to vector<32x512xf32>
    %5 = arith.addf %2, %4 : vector<32x512xf32>
    %6 = math.tanh %5 : vector<32x512xf32>
    %c0_5 = arith.constant 0 : index
    %c0_6 = arith.constant 0 : index
    %7 = vector.load %arg4[%c0_5, %c0_6] : memref<32x1xf32, #tpu.memory_space<vmem>>, vector<32x1xf32>
    %8 = vector.broadcast %7 : vector<32x1xf32> to vector<32x512xf32>
    %9 = arith.mulf %6, %8 : vector<32x512xf32>
    %cst_7 = arith.constant dense<0.000000e+00> : vector<512xf32>
    %10 = vector.multi_reduction <add>, %9, %cst_7 [0] : vector<32x512xf32> to vector<512xf32>
    %11 = vector.shape_cast %10 : vector<512xf32> to vector<1x512xf32>
    %c0_8 = arith.constant 0 : index
    %12 = memref.load %arg5[%c0_8] : memref<1xf32, #tpu.memory_space<smem>>
    %13 = vector.broadcast %12 : f32 to vector<1x512xf32>
    %14 = arith.addf %11, %13 : vector<1x512xf32>
    %c0_9 = arith.constant 0 : index
    %c0_10 = arith.constant 0 : index
    %15 = vector.load %arg6[%c0_9, %c0_10] : memref<1x512xf32, #tpu.memory_space<vmem>>, vector<1x512xf32>
    tpu.vector_store %arg6[%c0_9, %c0_10], %14 {strides = array<i32>} : memref<1x512xf32, #tpu.memory_space<vmem>>, vector<1x512xf32>,
    return
  }
  func.func @transform_0(%arg0: i32) -> (i32, i32) {
    %c0_i32 = arith.constant 0 : i32
    %c0_i32_0 = arith.constant 0 : i32
    return %c0_i32, %arg0 : i32, i32
  }
  func.func @transform_1(%arg0: i32) -> (i32, i32) {
    %c0_i32 = arith.constant 0 : i32
    %c0_i32_0 = arith.constant 0 : i32
    %c0_i32_1 = arith.constant 0 : i32
    return %c0_i32, %c0_i32_0 : i32, i32
  }
  func.func @transform_2(%arg0: i32) -> (i32, i32) {
    %c0_i32 = arith.constant 0 : i32
    %c0_i32_0 = arith.constant 0 : i32
    %c0_i32_1 = arith.constant 0 : i32
    return %c0_i32, %c0_i32_0 : i32, i32
  }
  func.func @transform_3(%arg0: i32) -> (i32, i32) {
    %c0_i32 = arith.constant 0 : i32
    %c0_i32_0 = arith.constant 0 : i32
    %c0_i32_1 = arith.constant 0 : i32
    return %c0_i32, %c0_i32_0 : i32, i32
  }
  func.func @transform_4(%arg0: i32) -> i32 {
    %c0_i32 = arith.constant 0 : i32
    %c0_i32_0 = arith.constant 0 : i32
    return %c0_i32 : i32
  }
  func.func @transform_5(%arg0: i32) -> (i32, i32) {
    %c0_i32 = arith.constant 0 : i32
    %c0_i32_0 = arith.constant 0 : i32
    return %c0_i32, %arg0 : i32, i32
  }
}

</mosaic_0001>

<bundles_post_ra>
// kernel: tpu_custom_call.1
= control target key start
LH: loop header
LB: loop body
LE: loop exit
PB: predicated region body
PF: predicated region fallthrough
CT: control target
= control target key end

     0   :  { %s1014_s0 = inlined_call_operand.vmem [shape: f32[5,1024], index: 0, kind: input, shape index: {}]   ;;  %s1015_s1 = inlined_call_operand.vmem [shape: f32[32,5], index: 1, kind: input, shape index: {}]   ;;  %s1016_s2 = inlined_call_operand.vmem [shape: f32[32,1], index: 2, kind: input, shape index: {}]   ;;  %s1017_s3 = inlined_call_operand.vmem [shape: f32[32,1], index: 3, kind: input, shape index: {}]   ;;  %s1018_s4 = inlined_call_operand.<no memory space> [shape: f32[1], index: 4, kind: input, shape index: {}]   ;;  %s1019_s5 = inlined_call_operand.hbm [shape: f32[1,1024], index: 5, kind: output, shape index: {}]  }
   0x1   :  { %10 = sst [smem:[#allocation2]] %s1018_s4 }
   0x2   :  { %11 = vsyncpa [#allocation4], 0 }
   0x3   :  { %13 = vsyncpa [#allocation4 + $0x1], 0  ;;  %s871_s20 = smov 0   ;;  %s873_s21 = smov 0  }
   0x4   :  { %s875_s22 = smov 0   ;;  %s877_s23 = smov 0  }
   0x5 LB: > { %s892_s4 = sadd.s32 4294967295, %s832_s23   ;;  %s669_s24 = sadd.s32 4294967294, %s832_s23   ;;  %s832_s23 = sphi %s877_s23, %s1025_s23   ;;  %s828_s22 = sphi %s875_s22, %s1024_s22   ;;  %s824_s21 = sphi %s873_s21, %s1023_s21   ;;  %s820_s20 = sphi %s871_s20, %s1022_s20  }
   0x6   : > { %s896_s25 = sadd.s32 1, %s832_s23   ;;  %s136_s26 = sadd.s32 1, %s828_s22 }
   0x7   : > { %s133_s27 = ssub.s32 %s832_s23, %s896_s25  ;;  %p146_p0 = scmp.ne.s32.totalorder %s828_s22, %s824_s21 }
   0x8   : > { %p134_p1 = scmp.eq.s32.totalorder %s133_s27, 0  ;;  %p147_p2 = scmp.eq.s32.totalorder %s892_s4, 1 }
   0x9   : > { %p152_p3 = scmp.ne.s32.totalorder %s824_s21, %s820_s20  ;;  %p153_p4 = scmp.eq.s32.totalorder %s669_s24, 1 }
   0xa   : > { %s907_s28 = scalar_select %p134_p1, %s828_s22, %s136_s26  }
   0xb   : > { %p909_p5 = por %p147_p2, %p146_p0  ;;  %p913_p6 = por %p153_p4, %p152_p3 }
   0xc   : > { %p672_p7 = scmp.ge.s32.totalorder %s832_s23, 1  ;;  %p192_p8 = scmp.lt.s32.totalorder %s832_s23, 3 }
   0xe   : > { %p193_p9 = pnand %p672_p7, %p192_p8 }
   0xf   : > { %s674_s6 = sshll.u32 (!%p193_p9), %s892_s4, 2  ;;  %v834_v0 = vmov (!%p193_p9), 0.0   ;;  %v235_v1 = vld [vmem:[%s1016_s2] sm:$0xff] (!%p193_p9)  ;;  %v835_v2 = vmov (!%p193_p9), 0   ;;  %v237_v3 = vld [vmem:[%s1016_s2 + $0x10] sm:$0xff] (!%p193_p9)  ;;  %v236_v4 = vld [vmem:[%s1016_s2 + $0x8] sm:$0xff] (!%p193_p9) }
  0x10   : > { %196 = sbr.rel (%p193_p9) target bundleno = 309 (0x135), region = 40  ;;  %p221_p10 = scmp.lt.s32.totalorder (!%p193_p9), %s674_s6, 7  ;;  %349 = vmatprep.mubr.f32.mxu0 (!%p193_p9), %v834_v0  ;;  %438 = vmatprep.mubr.f32.mxu1 (!%p193_p9), %v834_v0  ;;  %v238_v5 = vld [vmem:[%s1016_s2 + $0x18] sm:$0xff] (!%p193_p9)  ;;  %vm272_vm0 = vcmask (!%p193_p9), 1044480   ;;  %v227_v6 = vld [vmem:[%s1015_s1] sm:$0xff] (!%p193_p9)  ;;  %vm259_vm1 = vcmask (!%p193_p9), 39936  }
  0x11   : > { %736 = vset.pattern.permute.xlu0 (!%p193_p9), %v835_v2  ;;  %737 = vset.pattern.permute.xlu1 (!%p193_p9), %v835_v2  ;;  %v479_v11 = vld [vmem:[%s1017_s3] sm:$0xff] (!%p193_p9)  ;;  %v480_v12 = vld [vmem:[%s1017_s3 + $0x8] sm:$0xff] (!%p193_p9)  ;;  %v481_v14 = vld [vmem:[%s1017_s3 + $0x10] sm:$0xff] (!%p193_p9)  ;;  %s217_s19 = sand.u32 (!%p193_p9), 1, %s824_s21   ;;  %s693_s26 = sshll.u32 (!%p193_p9), %s892_s4, 6 }
  0x12   : > { %241 = vperm.xlu0 (!%p193_p9), %736, %v235_v1   ;;  %251 = vperm.xlu1 (!%p193_p9), %737, %v237_v3   ;;  %v228_v13 = vld [vmem:[%s1015_s1 + $0x8] sm:$0xff] (!%p193_p9)  ;;  %v482_v15 = vld [vmem:[%s1017_s3 + $0x18] sm:$0xff] (!%p193_p9)  ;;  %v229_v16 = vld [vmem:[%s1015_s1 + $0x10] sm:$0xff] (!%p193_p9)  ;;  %s673_s24 = sshll.u32 (!%p193_p9), %s217_s19, 2  ;;  %s972_s9 = scalar_lea.hbm (!%p193_p9), %s1019_s5, %s693_s26 }
  0x13   : > { %v230_v17 = vld [vmem:[%s1015_s1 + $0x18] sm:$0xff] (!%p193_p9)  ;;  %s219_s27 = scalar_lea.vmem (!%p193_p9), [#allocation3], %s673_s24  ;;  %s596_s10 = scalar_lea.sflag (!%p193_p9), [#allocation4], %s217_s19 }
  0x14   : > { %s837_s4 = smov (!%p193_p9), [#allocation3]  }
  0x15   : > { %s774_s12 = sshll.u32 (!%p193_p9), %s837_s4, 4  ;;  %s775_s12 = int_to_ptr.vmem [resolvable:$false] %s774_s12 }
  0x16   : > { %246 = vperm.xlu0 (!%p193_p9), %736, %v236_v4   ;;  %256 = vperm.xlu1 (!%p193_p9), %737, %v238_v5   ;;  %s776_s13 = scalar_lea.vmem (!%p193_p9), %s775_s12, 128 }
  0x17   : > { %s1027_s6 = smov (!%p221_p10, %s674_s6), 7 }
  0x18   : > { %s675_s15 = sshll.u32 %s1027_s6, 3  ;;  %s610_s6 = sshll.u32 %s219_s27, 4  ;;  %s974_s6 = int_to_ptr.vmem [resolvable:$true] %s610_s6 }
  0x19   : > { %s224_s18 = scalar_lea.vmem %s1014_s0, %s675_s15  ;;  %s770_s11 = scalar_lea.vmem %s974_s6, 64 }
  0x1a   : > { %v232_v7 = vld [vmem:[%s224_s18 + $0x8] sm:$0x1f]  ;;  %v234_v8 = vld [vmem:[%s224_s18 + $0x18] sm:$0x1f]  ;;  %v231_v9 = vld [vmem:[%s224_s18] sm:$0x1f]  ;;  %485 = vperm.xlu0 %736, %v479_v11   ;;  %490 = vperm.xlu1 %737, %v480_v12   ;;  %p771_p11 = scmp.ne.s32.totalorder %s974_s6, %s770_s11  ;;  %p777_p0 = scmp.lt.s32.totalorder %s974_s6, %s775_s12 }
  0x1b   : > { %676 = vmatprep.subr.msk.mxu0 %vm272_vm0, %v232_v7  ;;  %682 = vmatprep.subr.msk.mxu1 %vm272_vm0, %v234_v8  ;;  %v233_v10 = vld [vmem:[%s224_s18 + $0x10] sm:$0x1f]  ;;  %s555_s18 = sld [smem:[#allocation2]]  ;;  %p778_p1 = scmp.lt.s32.totalorder %s776_s13, %s770_s11 }
  0x1c   : > { %677 = vmatpush1.msk.msra.mxu0 %vm272_vm0, %v231_v9  ;;  %683 = vmatpush1.msk.msra.mxu1 %vm272_vm0, %v233_v10  ;;  %p772_p12 = pnand %p771_p11, %p909_p5 }
  0x1d   : > { %678 = vmatmul.mubr.msk.f32.vlgmr.msra.gmra.mrb[0].mxu0 %vm259_vm1, %v227_v6  ;;  %684 = vmatmul.mubr.msk.f32.vlgmr.msra.gmra.mrb[0].mxu1 %vm259_vm1, %v227_v6  ;;  %p779_p2 = por %p778_p1, %p777_p0 }
  0x1e   : > { %355 = vmatprep.mubr.f32.mxu0 %v834_v0  ;;  %444 = vmatprep.mubr.f32.mxu1 %v834_v0  ;;  %p773_p13 = pneg %p772_p12 }
  0x1f   : > { %495 = vperm.xlu0 %736, %v481_v14   ;;  %500 = vperm.xlu1 %737, %v482_v15  }
  0x20   : > { %p780_p3 = pnand %p779_p2, %p773_p13 }
  0x21   : > { %679 = vmatmul.mubr.msk.f32.gmra.mrb[2].mxu0 %vm259_vm1, %v228_v13  ;;  %685 = vmatmul.mubr.msk.f32.gmra.mrb[2].mxu1 %vm259_vm1, %v228_v13 }
  0x22   : > { %361 = vmatprep.mubr.f32.mxu0 %v834_v0  ;;  %450 = vmatprep.mubr.f32.mxu1 %v834_v0 }
  0x25   : > { %680 = vmatmul.mubr.msk.f32.gmra.mrb[4].mxu0 %vm259_vm1, %v229_v16  ;;  %686 = vmatmul.mubr.msk.f32.gmra.mrb[4].mxu1 %vm259_vm1, %v229_v16 }
  0x26   : > { %367 = vmatprep.mubr.f32.mxu0 %v834_v0  ;;  %456 = vmatprep.mubr.f32.mxu1 %v834_v0 }
  0x29   : > { %681 = vmatmul.mubr.msk.f32.gmra.mrb[6].mxu0 %vm259_vm1, %v230_v17  ;;  %687 = vmatmul.mubr.msk.f32.gmra.mrb[6].mxu1 %vm259_vm1, %v230_v17 }
  0x91   : > { %v242_v18 = vpop.permute.xlu0 %241  ;;  %v252_v27 = vpop.permute.xlu1 %251 }
  0x95   : > { %v247_v28 = vpop.permute.xlu0 %246  ;;  %v257_v45 = vpop.permute.xlu1 %256 }
  0x99   : > { %v486_v57 = vpop.permute.xlu0 %485  ;;  %v491_v60 = vpop.permute.xlu1 %490 }
  0x9e   : > { %v496_v10 = vpop.permute.xlu0 %495 }
  0xf0   : > { %v351_v19 = vpop.f32.mrb[0].mxu0  ;;  %v440_v20 = vpop.f32.mrb[0].mxu1 }
  0xf1   : > { %v352_v21 = vadd.f32 %v351_v19, %v242_v18  ;;  %v441_v22 = vadd.f32 %v440_v20, %v242_v18  ;;  %v353_v23 = vpop.f32.mrb[1].mxu0  ;;  %v442_v24 = vpop.f32.mrb[1].mxu1 }
  0xf2   : > { %v354_v25 = vadd.f32 %v353_v23, %v242_v18  ;;  %v443_v26 = vadd.f32 %v442_v24, %v242_v18  ;;  %v501_v23 = vpop.permute.xlu1 %500 }
  0xf3   : > { %738 = vtanh.f32 %v352_v21 }
  0xf4   : > { %740 = vtanh.f32 %v441_v22  ;;  %v357_v29 = vpop.f32.mrb[2].mxu0  ;;  %v446_v30 = vpop.f32.mrb[2].mxu1 }
  0xf5   : > { %742 = vtanh.f32 %v354_v25  ;;  %v358_v31 = vadd.f32 %v357_v29, %v247_v28  ;;  %v447_v32 = vadd.f32 %v446_v30, %v247_v28  ;;  %v359_v33 = vpop.f32.mrb[3].mxu0  ;;  %v448_v34 = vpop.f32.mrb[3].mxu1 }
  0xf6   : > { %744 = vtanh.f32 %v443_v26  ;;  %v360_v35 = vadd.f32 %v359_v33, %v247_v28  ;;  %v449_v36 = vadd.f32 %v448_v34, %v247_v28 }
  0xf7   : > { %746 = vtanh.f32 %v358_v31 }
  0xf8   : > { %748 = vtanh.f32 %v447_v32  ;;  %v363_v37 = vpop.f32.mrb[4].mxu0  ;;  %v452_v38 = vpop.f32.mrb[4].mxu1 }
  0xf9   : > { %750 = vtanh.f32 %v360_v35  ;;  %v364_v39 = vadd.f32 %v363_v37, %v252_v27  ;;  %v453_v40 = vadd.f32 %v452_v38, %v252_v27  ;;  %v365_v41 = vpop.f32.mrb[5].mxu0  ;;  %v454_v42 = vpop.f32.mrb[5].mxu1 }
  0xfa   : > { %752 = vtanh.f32 %v449_v36  ;;  %v366_v43 = vadd.f32 %v365_v41, %v252_v27  ;;  %v455_v44 = vadd.f32 %v454_v42, %v252_v27 }
  0xfb   : > { %754 = vtanh.f32 %v364_v39 }
  0xfc   : > { %756 = vtanh.f32 %v453_v40  ;;  %v369_v46 = vpop.f32.mrb[6].mxu0  ;;  %v458_v47 = vpop.f32.mrb[6].mxu1 }
  0xfd   : > { %v739_v48 = vpop.eup %738  ;;  %758 = vtanh.f32 %v366_v43  ;;  %v370_v49 = vadd.f32 %v369_v46, %v257_v45  ;;  %v459_v50 = vadd.f32 %v458_v47, %v257_v45  ;;  %v371_v51 = vpop.f32.mrb[7].mxu0 }
  0xfe   : > { %v460_v52 = vpop.f32.mrb[7].mxu1  ;;  %v741_v53 = vpop.eup %740  ;;  %760 = vtanh.f32 %v455_v44  ;;  %v372_v54 = vadd.f32 %v371_v51, %v257_v45  ;;  %v503_v62 = vmul.f32 %v739_v48, %v486_v57 }
  0xff   : > { %v461_v55 = vadd.f32 %v460_v52, %v257_v45  ;;  %v743_v56 = vpop.eup %742  ;;  %762 = vtanh.f32 %v370_v49  ;;  %v505_v1 = vmul.f32 %v741_v53, %v486_v57  ;;  %v570_v52 = vlaneseq }
 0x100   : > { %v745_v58 = vpop.eup %744  ;;  %764 = vtanh.f32 %v459_v50  ;;  %v504_v4 = vmul.f32 %v743_v56, %v486_v57  ;;  %v836_v50 = vmov 1966171168  }
 0x101   : > { %v747_v59 = vpop.eup %746  ;;  %766 = vtanh.f32 %v372_v54  ;;  %v506_v8 = vmul.f32 %v745_v58, %v486_v57  ;;  %v568_v51 = vunpack.c.l.s4 %v836_v50  ;;  %vm592_vm2 = vcmp.lt.s32.totalorder %v570_v52, 512 }
 0x102   : > { %v749_v61 = vpop.eup %748  ;;  %v507_v63 = vmul.f32 %v747_v59, %v491_v60  ;;  %768 = vtanh.f32 %v461_v55  ;;  %v556_v59 = vstv %s555_s18 }
 0x103   : > { %v751_v0 = vpop.eup %750  ;;  %v509_v2 = vmul.f32 %v749_v61, %v491_v60 }
 0x104   : > { %v753_v3 = vpop.eup %752  ;;  %v519_v5 = vadd.f32 %v507_v63, %v503_v62  ;;  %v508_v6 = vmul.f32 %v751_v0, %v491_v60  ;;  %v569_v62 = vunpack.c.0.s8 %v568_v51  ;;  %v571_v63 = vshrl.u32 %v570_v52, 7 }
 0x105   : > { %v755_v7 = vpop.eup %754  ;;  %v537_v9 = vadd.f32 %v509_v2, %v505_v1  ;;  %v510_v11 = vmul.f32 %v753_v3, %v491_v60 }
 0x106   : > { %v757_v12 = vpop.eup %756  ;;  %v528_v13 = vadd.f32 %v508_v6, %v504_v4  ;;  %v511_v14 = vmul.f32 %v755_v7, %v496_v10  ;;  %v572_v7 = vsub.s32 %v569_v62, %v571_v63 }
 0x107   : > { %v759_v15 = vpop.eup %758  ;;  %v546_v16 = vadd.f32 %v510_v11, %v506_v8  ;;  %v513_v17 = vmul.f32 %v757_v12, %v496_v10 }
 0x108   : > { %v761_v18 = vpop.eup %760  ;;  %v520_v19 = vadd.f32 %v519_v5, %v511_v14  ;;  %v512_v20 = vmul.f32 %v759_v15, %v496_v10 }
 0x109   : > { %v763_v21 = vpop.eup %762  ;;  %v538_v22 = vadd.f32 %v537_v9, %v513_v17  ;;  %v514_v24 = vmul.f32 %v761_v18, %v496_v10 }
 0x10a   : > { %v765_v25 = vpop.eup %764  ;;  %v529_v26 = vadd.f32 %v528_v13, %v512_v20  ;;  %v515_v27 = vmul.f32 %v763_v21, %v501_v23 }
 0x10b   : > { %v767_v28 = vpop.eup %766  ;;  %v547_v29 = vadd.f32 %v546_v16, %v514_v24  ;;  %v517_v30 = vmul.f32 %v765_v25, %v501_v23 }
 0x10c   : > { %v769_v31 = vpop.eup %768  ;;  %v521_v32 = vadd.f32 %v520_v19, %v515_v27  ;;  %v516_v33 = vmul.f32 %v767_v28, %v501_v23 }
 0x10d   : > { %v539_v34 = vadd.f32 %v538_v22, %v517_v30  ;;  %v518_v35 = vmul.f32 %v769_v31, %v501_v23 }
 0x10e   : > { %v522_v36 = vrot.slane %v521_v32, 4  ;;  %v530_v37 = vadd.f32 %v529_v26, %v516_v33 }
 0x10f   : > { %v540_v38 = vrot.slane %v539_v34, 4  ;;  %v548_v39 = vadd.f32 %v547_v29, %v518_v35 }
 0x110   : > { %v523_v40 = vadd.f32 %v522_v36, %v521_v32  ;;  %v531_v41 = vrot.slane %v530_v37, 4 }
 0x111   : > { %v541_v42 = vadd.f32 %v540_v38, %v539_v34  ;;  %v549_v43 = vrot.slane %v548_v39, 4 }
 0x112   : > { %v524_v44 = vrot.slane %v523_v40, 2  ;;  %v532_v45 = vadd.f32 %v531_v41, %v530_v37 }
 0x113   : > { %v542_v46 = vrot.slane %v541_v42, 2  ;;  %v550_v47 = vadd.f32 %v549_v43, %v548_v39 }
 0x114   : > { %v525_v48 = vadd.f32 %v524_v44, %v523_v40  ;;  %v533_v49 = vrot.slane %v532_v45, 2 }
 0x115   : > { %v543_v53 = vadd.f32 %v542_v46, %v541_v42  ;;  %v551_v54 = vrot.slane %v550_v47, 2 }
 0x116   : > { %v534_v55 = vadd.f32 %v533_v49, %v532_v45  ;;  %v526_v56 = vrot.slane %v525_v48, 1 }
 0x117   : > { %v552_v57 = vadd.f32 %v551_v54, %v550_v47  ;;  %v544_v58 = vrot.slane %v543_v53, 1 }
 0x118   : > { %v527_v60 = vadd.f32 %v526_v56, %v525_v48  ;;  %v535_v61 = vrot.slane %v534_v55, 1 }
 0x119   : > { %v545_v0 = vadd.f32 %v544_v58, %v543_v53  ;;  %v553_v1 = vrot.slane %v552_v57, 1 }
 0x11a   : > { %v536_v2 = vadd.f32 %v535_v61, %v534_v55  ;;  %v557_v3 = vadd.f32 %v556_v59, %v527_v60 }
 0x11b   : > { %v554_v4 = vadd.f32 %v553_v1, %v552_v57  ;;  %v559_v5 = vadd.f32 %v556_v59, %v545_v0 }
 0x11c   : > { %v558_v6 = vadd.f32 %v556_v59, %v536_v2 }
 0x11d   : > { %v560_v8 = vadd.f32 %v556_v59, %v554_v4 }
 0x11e   : > { %v565_v9 = vcombine.low %v557_v3, %v558_v6 }
 0x11f   : > { %v566_v10 = vcombine.low %v559_v5, %v560_v8 }
 0x120   : > { %v573_v11 = vrot.slane %v565_v9, %v572_v7 }
 0x121   : > { %v580_v12 = vrot.slane %v566_v10, %v572_v7 }
 0x123   : > { %v581_v13 = vcombine.low %v573_v11, %v580_v12 }
 0x125   : > { %v588_v14 = vrot.slane %v581_v13, %v572_v7 }
 0x127   : > { %594 = vst.msk [vmem:[%s219_s27] sm:$0xf] %vm592_vm2, %v588_v14 }
 0x128   : > { %783 = shalt.err (!%p780_p3)
}
 0x129   : > { %s784_s14 = scalar_lea.hbm %s972_s9, 64  ;;  %s788_s17 = scalar_lea.hbm %s1019_s5, 128 }
 0x12a   : > { %p785_p4 = scmp.ne.s32.totalorder %s972_s9, %s784_s14  ;;  %p789_p9 = scmp.lt.u32.totalorder %s972_s9, %s1019_s5 }
 0x12b   : > { %p790_p10 = scmp.lt.u32.totalorder %s788_s17, %s784_s14  ;;  %p792_p12 = scmp.lt.u32.totalorder %s784_s14, %s972_s9 }
 0x12c   : > { %p786_p7 = pnand %p785_p4, %p909_p5 }
 0x12d   : > { %p791_p11 = por %p790_p10, %p789_p9 }
 0x12e   : > { %p787_p8 = pneg %p786_p7 }
 0x12f   : > { %p793_p13 = por %p792_p12, %p791_p11 }
 0x131   : > { %p794_p0 = pnand %p793_p13, %p787_p8 }
 0x133   : > { %797 = shalt.err (!%p794_p0)
}
 0x134   : > { %694 = dma.vmem_to_hbm [thread:$0]  (%p909_p5), %s974_s6, 64, %s972_s9, %s596_s10  }
 0x135 PF: > { %p700_p1 = scmp.ge.s32.totalorder %s832_s23, 2  ;;  %s622_s24 = sand.u32 1, %s820_s20  }
 0x136   : > { %s623_s26 = scalar_lea.sflag [#allocation4], %s622_s24 }
 0x137   : > { %p697_p2 = pnand %p700_p1, %p913_p6 }
 0x139   : > { %815 = dma.done.wait (!%p697_p2), %s623_s26, 64  }
 0x13a   : > { %817 = vsyncadd (!%p697_p2), %s623_s26, 4294967232  ;;  %p16_p3 = scmp.ge.s32.totalorder %s896_s25, 4   ;;  %s1022_s20 = smov %s824_s21 }
 0x13b   : > { %s1023_s21 = smov %s828_s22  ;;  %s1024_s22 = smov %s907_s28 }
 0x13c   : > { %s1025_s23 = smov %s896_s25  ;;  %18 = sbr.rel (!%p16_p3) target bundleno = 5 (0x5), region = 75 }
 0x143   :  { %628 = vsyncpa [#allocation4], 1 }
 0x144   :  { %630 = vsyncpa [#allocation4 + $0x1], 1 }

</bundles_post_ra>
